<compile_context>
chip_gen: v5e
topology: v5e:2x2
jax: 0.10.0
libtpu: 0.0.40
codegen_flags: <defaults>
</compile_context>

<pallas_src>
import jax
import jax.numpy as jnp
from jax.experimental import pallas as pl
from jax.experimental.pallas import tpu as pltpu


def _conv1x1_kernel(w_ref, x_ref, o_ref):
    # w_ref: (Cout, Cin) bf16   x_ref: (Cin, THW) bf16   o_ref: (Cout, THW) f32
    o_ref[...] = jnp.dot(
        w_ref[...], x_ref[...], preferred_element_type=jnp.float32
    ).astype(o_ref.dtype)


def conv2d_1x1(x_nchw, weight, *, tile_hw=512, compute_dtype=jnp.bfloat16):
    """1x1 conv, stride 1, no bias.

    x_nchw: (N, Cin, H, W) float32
    weight: (Cout, Cin, 1, 1) float32  (PyTorch Conv2d weight layout)
    returns (N, Cout, H, W) float32
    """
    N, Cin, H, W = x_nchw.shape
    Cout = weight.shape[0]
    HW = H * W

    # Lane-align the spatial axis: pad HW up to the next multiple of 128
    # (784 -> 896). Padded columns are zeros; they are sliced off at the end.
    HW_pad = ((HW + 127) // 128) * 128

    # Free reshapes only — NCHW is already contiguous as (N, Cin, HW).
    x_mat = x_nchw.reshape(N, Cin, HW)
    if HW_pad != HW:
        x_mat = jnp.pad(x_mat, ((0, 0), (0, 0), (0, HW_pad - HW)))
    x_mat = x_mat.astype(compute_dtype)
    w_mat = weight.reshape(Cout, Cin).astype(compute_dtype)

    tile_hw = min(tile_hw, HW_pad)
    n_hw = pl.cdiv(HW_pad, tile_hw)

    flops = 2 * N * HW_pad * Cin * Cout
    bytes_accessed = (
        x_mat.size * jnp.dtype(compute_dtype).itemsize
        + w_mat.size * jnp.dtype(compute_dtype).itemsize
        + N * Cout * HW_pad * jnp.dtype(jnp.float32).itemsize
    )

    out = pl.pallas_call(
        _conv1x1_kernel,
        out_shape=jax.ShapeDtypeStruct((N, Cout, HW_pad), jnp.float32),
        grid=(N, n_hw),
        in_specs=[
            # Weight: same full block for every grid step (stays VMEM-resident).
            pl.BlockSpec((Cout, Cin), lambda n, j: (0, 0)),
            # Activations: squeeze batch dim, (Cin, tile_hw) lane-aligned tile.
            pl.BlockSpec((pl.Squeezed(), Cin, tile_hw), lambda n, j: (n, 0, j)),
        ],
        out_specs=pl.BlockSpec((pl.Squeezed(), Cout, tile_hw), lambda n, j: (n, 0, j)),
        compiler_params=pltpu.CompilerParams(
            dimension_semantics=("parallel", "parallel"),
        ),
        cost_estimate=pl.CostEstimate(
            flops=flops, transcendentals=0, bytes_accessed=bytes_accessed
        ),
    )(w_mat, x_mat)

    # Drop spatial padding; free reshape back to NCHW.
    return out[:, :, :HW].reshape(N, Cout, H, W)


if __name__ == "__main__":
    key = jax.random.PRNGKey(0)
    kx, kw = jax.random.split(key)

    # Shapes implied by the module: Conv2d(122, 122, 1x1) on (1, 122, 28, 28).
    N, Cin, H, W = 1, 122, 28, 28
    Cout = 122
    x = jax.random.normal(kx, (N, Cin, H, W), dtype=jnp.float32)
    weight = jax.random.normal(kw, (Cout, Cin, 1, 1), dtype=jnp.float32) * 0.05

    out = conv2d_1x1(x, weight)
    out = jax.block_until_ready(out)
    assert out.shape == (N, Cout, H, W)

    # Exact-math check: reference using the SAME bf16-cast inputs with f32
    # accumulation — verifies the kernel independently of the bf16 tradeoff.
    x_bf = x.astype(jnp.bfloat16)
    w_bf = weight.reshape(Cout, Cin).astype(jnp.bfloat16)
    ref_bf = jnp.einsum(
        "oc,nchw->nohw", w_bf, x_bf, preferred_element_type=jnp.float32
    )
    assert jnp.allclose(out, ref_bf, atol=1e-3, rtol=1e-3)

    # Precision-tradeoff check vs the full-f32 PyTorch-equivalent conv
    # (tolerance relaxed because inputs were rounded to bf16).
    ref_f32 = jnp.einsum("oc,nchw->nohw", weight.reshape(Cout, Cin), x)
    assert jnp.allclose(out, ref_f32, atol=5e-2, rtol=5e-2)

    print("KERNEL_OK")
</pallas_src>

<mosaic_0001>
module attributes {stable_mosaic.version = 11 : i64} {
  func.func @_conv1x1_kernel(%arg0: i32, %arg1: i32, %arg2: memref<122x122xbf16, #tpu.memory_space<vmem>>, %arg3: memref<1x122x512xbf16, #tpu.memory_space<vmem>>, %arg4: memref<1x122x512xf32, #tpu.memory_space<vmem>>) attributes {dimension_semantics = [#tpu.dimension_semantics<parallel>, #tpu.dimension_semantics<parallel>], iteration_bounds = array<i64: 1, 2>, scalar_prefetch = 0 : i64, scratch_operands = 0 : i64, tpu.core_type = #tpu.core_type<tc>, window_params = [{pipeline_mode = #tpu.pipeline_mode<synchronous>, transform_indices = @transform_0, window_bounds = array<i64: 122, 122>}, {transform_indices = @transform_1, window_bounds = array<i64: 1, 122, 512>}, {transform_indices = @transform_2, window_bounds = array<i64: 1, 122, 512>}]} {
    %c0 = arith.constant 0 : index
    %c0_0 = arith.constant 0 : index
    %0 = vector.load %arg2[%c0, %c0_0] : memref<122x122xbf16, #tpu.memory_space<vmem>>, vector<122x122xbf16>
    %c0_1 = arith.constant 0 : index
    %c0_2 = arith.constant 0 : index
    %c0_3 = arith.constant 0 : index
    %1 = vector.load %arg3[%c0_1, %c0_2, %c0_3] : memref<1x122x512xbf16, #tpu.memory_space<vmem>>, vector<1x122x512xbf16>
    %2 = vector.shape_cast %1 : vector<1x122x512xbf16> to vector<122x512xbf16>
    %cst = arith.constant dense<0.000000e+00> : vector<122x512xf32>
    %3 = tpu.matmul %0, %2, %cst {dimension_numbers = #tpu.dot_dimension_numbers<[1], [0], [0], [1], [0, 0, 1, 1], [], []>} : vector<122x122xbf16>, vector<122x512xbf16>, vector<122x512xf32> -> vector<122x512xf32>
    %c0_4 = arith.constant 0 : index
    %c0_5 = arith.constant 0 : index
    %c0_6 = arith.constant 0 : index
    %4 = vector.load %arg4[%c0_4, %c0_5, %c0_6] : memref<1x122x512xf32, #tpu.memory_space<vmem>>, vector<1x122x512xf32>
    %5 = vector.shape_cast %4 : vector<1x122x512xf32> to vector<122x512xf32>
    %6 = vector.shape_cast %3 : vector<122x512xf32> to vector<1x122x512xf32>
    tpu.vector_store %arg4[%c0_4, %c0_5, %c0_6], %6 {strides = array<i32>} : memref<1x122x512xf32, #tpu.memory_space<vmem>>, vector<1x122x512xf32>,
    return
  }
  func.func @transform_0(%arg0: i32, %arg1: i32) -> (i32, i32) {
    %c0_i32 = arith.constant 0 : i32
    %c0_i32_0 = arith.constant 0 : i32
    %c0_i32_1 = arith.constant 0 : i32
    return %c0_i32, %c0_i32_0 : i32, i32
  }
  func.func @transform_1(%arg0: i32, %arg1: i32) -> (i32, i32, i32) {
    %c0_i32 = arith.constant 0 : i32
    %c0_i32_0 = arith.constant 0 : i32
    return %arg0, %c0_i32, %arg1 : i32, i32, i32
  }
  func.func @transform_2(%arg0: i32, %arg1: i32) -> (i32, i32, i32) {
    %c0_i32 = arith.constant 0 : i32
    %c0_i32_0 = arith.constant 0 : i32
    return %arg0, %c0_i32, %arg1 : i32, i32, i32
  }
}

</mosaic_0001>

<bundles_post_ra>
// kernel: tpu_custom_call.1
= control target key start
LH: loop header
LB: loop body
LE: loop exit
PB: predicated region body
PF: predicated region fallthrough
CT: control target
= control target key end

     0   :  { %7 = vsyncpa [#allocation3], 0  ;;  %s2938_s0 = inlined_call_operand.hbm [shape: bf16[122,122], index: 0, kind: input, shape index: {}]   ;;  %s2939_s1 = inlined_call_operand.hbm [shape: bf16[1,122,896], index: 1, kind: input, shape index: {}]   ;;  %s2940_s2 = inlined_call_operand.vmem [shape: f32[1,122,896], index: 2, kind: output, shape index: {}]  }
   0x1   :  { %8 = vsyncpa [#allocation5], 0 }
   0x2   :  { %10 = vsyncpa [#allocation5 + $0x1], 0  ;;  %s2087_s9 = smov 0   ;;  %s2089_s10 = smov 0  }
   0x3   :  { %s2091_s11 = smov 0   ;;  %s2093_s12 = smov 0  }
   0x4   :  { %s2095_s13 = smov 0   ;;  %s2097_s14 = smov 0  }
   0x5 LB: > { %s1329_s15 = sadd.s32 4294967295, %s1998_s14   ;;  %s25_s16 = sadd.s32 1, %s1994_s13  ;;  %s1998_s14 = sphi %s2097_s14, %s16_s14   ;;  %s1994_s13 = sphi %s2095_s13, %s2971_s13   ;;  %s1990_s12 = sphi %s2093_s12, %s2970_s12   ;;  %s1986_s11 = sphi %s2091_s11, %s2969_s11   ;;  %s1982_s10 = sphi %s2089_s10, %s2968_s10   ;;  %s1978_s9 = sphi %s2087_s9, %s2967_s9  }
   0x6   : > { %p26_p0 = scmp.ge.s32.totalorder %s25_s16, 2  ;;  %s58_s17 = sadd.s32 1, %s1986_s11 }
   0x7   : > { %p65_p1 = scmp.ne.s32.totalorder %s1986_s11, %s1982_s10  ;;  %p66_p2 = scmp.eq.s32.totalorder %s1998_s14, 0 }
   0x8   : > { %s2973_s16 = smov (%p26_p0, %s25_s16), 0  ;;  %p71_p4 = scmp.ne.s32.totalorder %s1982_s10, %s1978_s9 }
   0x9   : > { %p2123_p3 = por %p66_p2, %p65_p1  ;;  %s54_s19 = ssub.s32 %s1994_s13, %s2973_s16 }
   0xa   : > { %p2130_p5 = scmp.eq.s32.totalorder %s1329_s15, 0  ;;  %p56_p6 = scmp.eq.s32.totalorder %s54_s19, 0 }
   0xb   : > { %p97_p7 = scmp.eq.s32.totalorder %s1329_s15, 1  ;;  %p1331_p9 = scmp.ge.s32.totalorder %s1998_s14, 1 }
   0xc   : > { %p2136_p8 = por %p2130_p5, %p71_p4  ;;  %p110_p11 = scmp.lt.s32.totalorder %s1998_s14, 3 }
   0xd   : > { %s2142_s22 = scalar_select %p56_p6, %s1986_s11, %s58_s17  }
   0xe   : > { %p2144_p10 = por %p97_p7, %p65_p1  ;;  %s121_s26 = sshll.u32 %s2938_s0, 4  ;;  %s122_s26 = int_to_ptr.hbm [resolvable:$true] %s121_s26 }
   0xf   : > { %p2152_p12 = pnand %p1331_p9, %p110_p11  ;;  %s2064_s28 = smov [#allocation2]  }
  0x10   : > { %s123_s29 = sshll.u32 %s2064_s28, 4  ;;  %s2065_s30 = smov 64   ;;  %s124_s29 = int_to_ptr.vmem [resolvable:$true] %s123_s29 }
  0x11   : > { %p1622_p13 = pneg %p2152_p12  ;;  %s2066_s3 = smov 4  }
  0x12   : > { %p1333_p1 = scmp.ge.s32.totalorder %s1998_s14, 2 }
  0x13   : > { %p1623_p0 = pnand %p1622_p13, %p2130_p5 }
  0x14   : > { %133 = sbr.rel (%p1333_p1) target bundleno = 51 (0x33), region = 20 }
  0x15   : > { %1625 = dma.hbm_to_vmem [thread:$0]  (!%p1623_p0), %s122_s26, 1024, %s124_s29, [#allocation3], %s2065_s30, %s2065_s30, %s2066_s3  }
  0x19   : > { %136 = sbr.rel (!%p2123_p3) target bundleno = 51 (0x33), region = 24  ;;  %s137_s4 = sand.u32 (%p2123_p3), 1, %s1986_s11  }
  0x1a   : > { %s1335_s5 = sshll.u32 (%p2123_p3), %s1994_s13, 2  ;;  %s1334_s6 = sshll.u32 (%p2123_p3), %s137_s4, 8 }
  0x1b   : > { %s143_s7 = ssub.s32 (%p2123_p3), 7, %s1335_s5  ;;  %s2168_s17 = scalar_lea.sflag (%p2123_p3), [#allocation5], %s137_s4 }
  0x1c   : > { %p144_p2 = scmp.lt.s32.totalorder (%p2123_p3), %s143_s7, 4  ;;  %s141_s19 = scalar_lea.vmem (%p2123_p3), [#allocation4], %s1334_s6 }
  0x1e   : > { %s2975_s7 = smov (!%p144_p2, %s143_s7), 4 }
  0x1f   : > { %s1336_s8 = sshll.u32 %s2975_s7, 6 }
  0x20   : > { %s147_s9 = ssub.s32 256, %s1336_s8 }
  0x21   : > { %s148_s15 = sshll.u32 %s147_s9, 4 }
  0x22   : > { %149 = vsyncadd %s2168_s17, %s148_s15  ;;  %p2171_p3 = scmp.ne.s32.totalorder %s1336_s8, 0  ;;  %s1569_s24 = sshll.u32 %s1994_s13, 4 }
  0x23   : > { %s154_s28 = scalar_lea.hbm %s2939_s1, %s1569_s24  ;;  %s1339_s29 = sshll.u32 %s2975_s7, 2 }
  0x24   : > { %s157_s30 = sshll.u32 %s154_s28, 4  ;;  %s159_s3 = sshll.u32 %s141_s19, 4  ;;  %s158_s30 = int_to_ptr.hbm [resolvable:$true] %s157_s30  ;;  %s160_s3 = int_to_ptr.vmem [resolvable:$true] %s159_s3 }
  0x25   : > { %s1571_s4 = sshll.u32 %s2975_s7, 10  ;;  %s1860_s6 = sshra.s32 %s160_s3, 4  ;;  %s1861_s6 = int_to_ptr.vmem [resolvable:$true] %s1860_s6 }
  0x26   : > { %s1843_s5 = sshrl.u32 %s1571_s4, 4  ;;  %s2067_s8 = smov [#allocation4]  }
  0x27   : > { %s1867_s9 = scalar_lea.vmem %s1861_s6, %s1843_s5  ;;  %s1871_s15 = scalar_lea.vmem %s2067_s8, 512 }
  0x28   : > { %p1868_p4 = scmp.ne.s32.totalorder %s1861_s6, %s1867_s9  ;;  %p1873_p9 = scmp.lt.s32.totalorder %s1871_s15, %s1867_s9 }
  0x2a   : > { %p1869_p6 = pnand %p1868_p4, %p2171_p3 }
  0x2c   : > { %p1870_p7 = pneg %p1869_p6 }
  0x2e   : > { %p1875_p11 = pnand %p1873_p9, %p1870_p7 }
  0x30   : > { %1878 = shalt.err (!%p1875_p11)
}
  0x31   : > { %s2068_s24 = smov 448   ;;  %s2069_s19 = smov 256  }
  0x32   : > { %165 = dma.hbm_to_vmem [thread:$0]  (%p2171_p3), %s158_s30, %s1571_s4, %s160_s3, %s2168_s17, %s2068_s24, %s2069_s19, %s1339_s29  }
  0x33 PF: > { %171 = sbr.rel (%p2152_p12) target bundleno = 548 (0x224), region = 28 }
  0x38   : > { %1969 = dma.done.wait (%p2130_p5), [#allocation3], 1024  }
  0x39   : > { %1971 = vsyncadd (%p2130_p5), [#allocation3], 4294966272  ;;  %s2193_s7 = sand.u32 1, %s1982_s10  }
  0x3a   : > { %s1344_s25 = sshll.u32 %s2193_s7, 8  ;;  %s179_s18 = scalar_lea.sflag [#allocation5], %s2193_s7 }
  0x3b   : > { %s2197_s17 = scalar_lea.vmem [#allocation4], %s1344_s25 }
  0x3c   : > { %1973 = dma.done.wait (%p2136_p8), %s179_s18, 4096  }
  0x3d   : > { %1975 = vsyncadd (%p2136_p8), %s179_s18, 4294963200  ;;  %vm482_vm0 = vcmask 1044480   ;;  %v1492_v0 = vld [vmem:[%s2197_s17 + $0xe0] sm:$0xf]  ;;  %v1610_v1 = vld [vmem:[%s2197_s17 + $0xec] sm:$0x10] }
  0x3e   : > { %v1608_v2 = vld [vmem:[%s2197_s17 + $0xe4] sm:$0xf]  ;;  %v1493_v3 = vor.u32 %v1610_v1, %v1492_v0  ;;  %v1494_v4 = vld [vmem:[%s2197_s17 + $0xf0] sm:$0x10]  ;;  %v1500_v5 = vld [vmem:[%s2197_s17 + $0xe8] sm:$0xf] }
  0x3f   : > { %v1611_v6 = vld [vmem:[%s2197_s17 + $0xf4] sm:$0x10]  ;;  %v1497_v7 = vor.u32 %v1608_v2, %v1494_v4  ;;  %v1609_v9 = vld [vmem:[%s2197_s17 + $0xec] sm:$0xf]  ;;  %v1502_v10 = vld [vmem:[%s2197_s17 + $0xf8] sm:$0x10] }
  0x40   : > { %v1501_v8 = vor.u32 %v1611_v6, %v1500_v5  ;;  %v1476_v11 = vld [vmem:[%s2197_s17 + $0xc0] sm:$0xf]  ;;  %v484_v12 = vsel %vm482_vm0, %v1493_v3, 0  ;;  %v1505_v13 = vor.u32 %v1609_v9, %v1502_v10  ;;  %v1606_v14 = vld [vmem:[%s2197_s17 + $0xcc] sm:$0xf0]  ;;  %vm457_vm1 = vcmask 998400  }
  0x41   : > { %v1604_v15 = vld [vmem:[%s2197_s17 + $0xc4] sm:$0xf]  ;;  %495 = vmatpush.bf16.msra.mxu0 %v484_v12  ;;  %v487_v16 = vsel %vm482_vm0, %v1497_v7, 0  ;;  %v1477_v18 = vor.u32 %v1606_v14, %v1476_v11  ;;  %v1478_v19 = vld [vmem:[%s2197_s17 + $0xd0] sm:$0xf0]  ;;  %s1345_s20 = sshll.u32 %s2193_s7, 9 }
  0x42   : > { %v490_v17 = vsel %vm482_vm0, %v1501_v8, 0  ;;  %v1484_v20 = vld [vmem:[%s2197_s17 + $0xc8] sm:$0xf]  ;;  %544 = vmatpush.bf16.msra.mxu1 %v487_v16  ;;  %v493_v21 = vsel %vm482_vm0, %v1505_v13, 0  ;;  %v1481_v22 = vor.u32 %v1604_v15, %v1478_v19  ;;  %v1607_v23 = vld [vmem:[%s2197_s17 + $0xd4] sm:$0xf0] }
  0x43   : > { %593 = vmatpush.bf16.msra.mxu2 %v490_v17  ;;  %v1605_v24 = vld [vmem:[%s2197_s17 + $0xcc] sm:$0xf]  ;;  %642 = vmatpush.bf16.msra.mxu3 %v493_v21  ;;  %v1485_v25 = vor.u32 %v1607_v23, %v1484_v20  ;;  %v1486_v26 = vld [vmem:[%s2197_s17 + $0xd8] sm:$0xf0]  ;;  %v1460_v27 = vld [vmem:[%s2197_s17 + $0xa0] sm:$0xf] }
  0x44   : > { %v1602_v28 = vld [vmem:[%s2197_s17 + $0xac] sm:$0xf0]  ;;  %v1489_v29 = vor.u32 %v1605_v24, %v1486_v26  ;;  %v1600_v30 = vld [vmem:[%s2197_s17 + $0xa4] sm:$0xf]  ;;  %v1462_v31 = vld [vmem:[%s2197_s17 + $0xb0] sm:$0xf0] }
  0x45   : > { %v1468_v32 = vld [vmem:[%s2197_s17 + $0xa8] sm:$0xf]  ;;  %496 = vmatpush.bf16.msra.mxu0 %v1477_v18  ;;  %v1461_v33 = vor.u32 %v1602_v28, %v1460_v27  ;;  %v1603_v34 = vld [vmem:[%s2197_s17 + $0xb4] sm:$0xf0]  ;;  %v1601_v35 = vld [vmem:[%s2197_s17 + $0xac] sm:$0xf]  ;;  %v1465_v37 = vor.u32 %v1600_v30, %v1462_v31 }
  0x46   : > { %v1470_v36 = vld [vmem:[%s2197_s17 + $0xb8] sm:$0xf0]  ;;  %545 = vmatpush.bf16.msra.mxu1 %v1481_v22  ;;  %v1469_v38 = vor.u32 %v1603_v34, %v1468_v32  ;;  %v1444_v39 = vld [vmem:[%s2197_s17 + $0x80] sm:$0xf]  ;;  %v1598_v40 = vld [vmem:[%s2197_s17 + $0x8c] sm:$0xf0] }
  0x47   : > { %594 = vmatpush.bf16.msra.mxu2 %v1485_v25  ;;  %v1596_v41 = vld [vmem:[%s2197_s17 + $0x84] sm:$0xf]  ;;  %643 = vmatpush.bf16.msra.mxu3 %v1489_v29  ;;  %v1473_v42 = vor.u32 %v1601_v35, %v1470_v36  ;;  %v1446_v43 = vld [vmem:[%s2197_s17 + $0x90] sm:$0xf0]  ;;  %v1452_v44 = vld [vmem:[%s2197_s17 + $0x88] sm:$0xf]  ;;  %v1445_v48 = vor.u32 %v1598_v40, %v1444_v39 }
  0x48   : > { %v1599_v45 = vld [vmem:[%s2197_s17 + $0x94] sm:$0xf0]  ;;  %v1597_v46 = vld [vmem:[%s2197_s17 + $0x8c] sm:$0xf]  ;;  %v1454_v47 = vld [vmem:[%s2197_s17 + $0x98] sm:$0xf0]  ;;  %v1449_v49 = vor.u32 %v1596_v41, %v1446_v43 }
  0x49   : > { %497 = vmatpush.bf16.msra.mxu0 %v1461_v33  ;;  %v1453_v50 = vor.u32 %v1599_v45, %v1452_v44  ;;  %v1428_v51 = vld [vmem:[%s2197_s17 + $0x60] sm:$0xf]  ;;  %v1594_v52 = vld [vmem:[%s2197_s17 + $0x6c] sm:$0xf0]  ;;  %v1592_v53 = vld [vmem:[%s2197_s17 + $0x64] sm:$0xf]  ;;  %v1457_v54 = vor.u32 %v1597_v46, %v1454_v47 }
  0x4a   : > { %546 = vmatpush.bf16.msra.mxu1 %v1465_v37  ;;  %v1430_v55 = vld [vmem:[%s2197_s17 + $0x70] sm:$0xf0]  ;;  %v1436_v56 = vld [vmem:[%s2197_s17 + $0x68] sm:$0xf]  ;;  %v1595_v57 = vld [vmem:[%s2197_s17 + $0x74] sm:$0xf0]  ;;  %v1429_v60 = vor.u32 %v1594_v52, %v1428_v51 }
  0x4b   : > { %595 = vmatpush.bf16.msra.mxu2 %v1469_v38  ;;  %644 = vmatpush.bf16.msra.mxu3 %v1473_v42  ;;  %v1593_v58 = vld [vmem:[%s2197_s17 + $0x6c] sm:$0xf]  ;;  %v1438_v59 = vld [vmem:[%s2197_s17 + $0x78] sm:$0xf0]  ;;  %v1433_v61 = vor.u32 %v1592_v53, %v1430_v55  ;;  %v1437_v62 = vor.u32 %v1595_v57, %v1436_v56  ;;  %v1412_v63 = vld [vmem:[%s2197_s17 + $0x40] sm:$0xf] }
  0x4c   : > { %v1590_v0 = vld [vmem:[%s2197_s17 + $0x4c] sm:$0xf0]  ;;  %v1588_v1 = vld [vmem:[%s2197_s17 + $0x44] sm:$0xf]  ;;  %v1441_v2 = vor.u32 %v1593_v58, %v1438_v59  ;;  %v1414_v3 = vld [vmem:[%s2197_s17 + $0x50] sm:$0xf0] }
  0x4d   : > { %498 = vmatpush.bf16.msra.mxu0 %v1445_v48  ;;  %v1420_v4 = vld [vmem:[%s2197_s17 + $0x48] sm:$0xf]  ;;  %v1591_v5 = vld [vmem:[%s2197_s17 + $0x54] sm:$0xf0]  ;;  %v1589_v6 = vld [vmem:[%s2197_s17 + $0x4c] sm:$0xf]  ;;  %v1413_v8 = vor.u32 %v1590_v0, %v1412_v63  ;;  %v1417_v9 = vor.u32 %v1588_v1, %v1414_v3 }
  0x4e   : > { %547 = vmatpush.bf16.msra.mxu1 %v1449_v49  ;;  %v1422_v7 = vld [vmem:[%s2197_s17 + $0x58] sm:$0xf0]  ;;  %v1421_v10 = vor.u32 %v1591_v5, %v1420_v4  ;;  %v1396_v11 = vld [vmem:[%s2197_s17 + $0x20] sm:$0xf]  ;;  %v1586_v12 = vld [vmem:[%s2197_s17 + $0x2c] sm:$0xf0] }
  0x4f   : > { %596 = vmatpush.bf16.msra.mxu2 %v1453_v50  ;;  %645 = vmatpush.bf16.msra.mxu3 %v1457_v54  ;;  %v1584_v13 = vld [vmem:[%s2197_s17 + $0x24] sm:$0xf]  ;;  %v1425_v14 = vor.u32 %v1589_v6, %v1422_v7  ;;  %v1398_v15 = vld [vmem:[%s2197_s17 + $0x30] sm:$0xf0]  ;;  %v1404_v16 = vld [vmem:[%s2197_s17 + $0x28] sm:$0xf]  ;;  %v1397_v20 = vor.u32 %v1586_v12, %v1396_v11 }
  0x50   : > { %v1587_v17 = vld [vmem:[%s2197_s17 + $0x34] sm:$0xf0]  ;;  %v1585_v18 = vld [vmem:[%s2197_s17 + $0x2c] sm:$0xf]  ;;  %v1406_v19 = vld [vmem:[%s2197_s17 + $0x38] sm:$0xf0]  ;;  %v1401_v21 = vor.u32 %v1584_v13, %v1398_v15 }
  0x51   : > { %499 = vmatpush.bf16.msra.mxu0 %v1429_v60  ;;  %v1405_v22 = vor.u32 %v1587_v17, %v1404_v16  ;;  %v1380_v23 = vld [vmem:[%s2197_s17] sm:$0xf]  ;;  %v1582_v24 = vld [vmem:[%s2197_s17 + $0xc] sm:$0xf0]  ;;  %v1580_v25 = vld [vmem:[%s2197_s17 + $0x4] sm:$0xf]  ;;  %v1409_v26 = vor.u32 %v1585_v18, %v1406_v19 }
  0x52   : > { %548 = vmatpush.bf16.msra.mxu1 %v1433_v61  ;;  %v1382_v27 = vld [vmem:[%s2197_s17 + $0x10] sm:$0xf0]  ;;  %v1388_v28 = vld [vmem:[%s2197_s17 + $0x8] sm:$0xf]  ;;  %v1583_v29 = vld [vmem:[%s2197_s17 + $0x14] sm:$0xf0]  ;;  %v1381_v32 = vor.u32 %v1582_v24, %v1380_v23 }
  0x53   : > { %597 = vmatpush.bf16.msra.mxu2 %v1437_v62  ;;  %646 = vmatpush.bf16.msra.mxu3 %v1441_v2  ;;  %v1581_v30 = vld [vmem:[%s2197_s17 + $0xc] sm:$0xf]  ;;  %v1390_v31 = vld [vmem:[%s2197_s17 + $0x18] sm:$0xf0]  ;;  %v1385_v33 = vor.u32 %v1580_v25, %v1382_v27  ;;  %v1389_v34 = vor.u32 %v1583_v29, %v1388_v28  ;;  %v1572_v36 = vld [vmem:[#allocation2] sm:$0xff]  ;;  %s2304_s21 = scalar_lea.vmem [#allocation6], %s1345_s20  }
  0x54   : > { %v1393_v35 = vor.u32 %v1581_v30, %v1390_v31  ;;  %v1573_v37 = vld [vmem:[#allocation2 + $0x8] sm:$0xff]  ;;  %v1574_v38 = vld [vmem:[#allocation2 + $0x10] sm:$0xff]  ;;  %v1575_v39 = vld [vmem:[#allocation2 + $0x18] sm:$0xff]  ;;  %s1539_s27 = sshll.u32 (%p2144_p10), %s1990_s12, 2  ;;  %s1612_s26 = sshll.u32 (%p2144_p10), %s1990_s12, 5 }
  0x55   : > { %500 = vmatpush.bf16.msra.mxu0 %v1413_v8  ;;  %v1576_v40 = vld [vmem:[#allocation2 + $0x20] sm:$0xff]  ;;  %v1577_v41 = vld [vmem:[#allocation2 + $0x28] sm:$0xff]  ;;  %v1578_v42 = vld [vmem:[#allocation2 + $0x30] sm:$0xff]  ;;  %s763_s28 = ssub.s32 (%p2144_p10), 7, %s1539_s27  ;;  %s2377_s3 = scalar_lea.vmem (%p2144_p10), %s2940_s2, %s1612_s26  }
  0x56   : > { %549 = vmatpush.bf16.msra.mxu1 %v1417_v9  ;;  %v1376_v43 = vld [vmem:[#allocation2 + $0x38] sm:$0xf]  ;;  %v1579_v44 = vld [vmem:[#allocation2 + $0x38] sm:$0x10]  ;;  %p764_p5 = scmp.lt.s32.totalorder (%p2144_p10), %s763_s28, 4 }
  0x57   : > { %598 = vmatpush.bf16.msra.mxu2 %v1421_v10  ;;  %647 = vmatpush.bf16.msra.mxu3 %v1425_v14  ;;  %v1377_v45 = vor.u32 %v1579_v44, %v1376_v43 }
  0x59   : > { %501 = vmatpush.bf16.msra.mxu0 %v1397_v20 }
  0x5a   : > { %550 = vmatpush.bf16.msra.mxu1 %v1401_v21 }
  0x5b   : > { %599 = vmatpush.bf16.msra.mxu2 %v1405_v22  ;;  %648 = vmatpush.bf16.msra.mxu3 %v1409_v26 }
  0x5d   : > { %502 = vmatpush.bf16.msra.mxu0 %v1381_v32 }
  0x5e   : > { %551 = vmatpush.bf16.msra.mxu1 %v1385_v33 }
  0x5f   : > { %600 = vmatpush.bf16.msra.mxu2 %v1389_v34  ;;  %649 = vmatpush.bf16.msra.mxu3 %v1393_v35 }
  0x60   : > { %1506 = vmatmul.msk.bf16.vlgmr.msra.gmra.mxu0 %vm457_vm1, %v1572_v36 }
  0x61   : > { %1514 = vmatmul.msk.bf16.vlgmr.msra.gmra.mxu1 %vm457_vm1, %v1572_v36 }
  0x62   : > { %1522 = vmatmul.msk.bf16.vlgmr.msra.gmra.mxu2 %vm457_vm1, %v1572_v36  ;;  %1530 = vmatmul.msk.bf16.vlgmr.msra.gmra.mxu3 %vm457_vm1, %v1572_v36 }
  0x70   : > { %1507 = vmatmul.msk.bf16.gmra.mxu0 %vm457_vm1, %v1573_v37 }
  0x71   : > { %1515 = vmatmul.msk.bf16.gmra.mxu1 %vm457_vm1, %v1573_v37 }
  0x72   : > { %1523 = vmatmul.msk.bf16.gmra.mxu2 %vm457_vm1, %v1573_v37  ;;  %1531 = vmatmul.msk.bf16.gmra.mxu3 %vm457_vm1, %v1573_v37 }
  0x80   : > { %1508 = vmatmul.msk.bf16.gmra.mxu0 %vm457_vm1, %v1574_v38 }
  0x81   : > { %1516 = vmatmul.msk.bf16.gmra.mxu1 %vm457_vm1, %v1574_v38 }
  0x82   : > { %1524 = vmatmul.msk.bf16.gmra.mxu2 %vm457_vm1, %v1574_v38  ;;  %1532 = vmatmul.msk.bf16.gmra.mxu3 %vm457_vm1, %v1574_v38 }
  0x90   : > { %1509 = vmatmul.msk.bf16.gmra.mxu0 %vm457_vm1, %v1575_v39 }
  0x91   : > { %1517 = vmatmul.msk.bf16.gmra.mxu1 %vm457_vm1, %v1575_v39 }
  0x92   : > { %1525 = vmatmul.msk.bf16.gmra.mxu2 %vm457_vm1, %v1575_v39  ;;  %1533 = vmatmul.msk.bf16.gmra.mxu3 %vm457_vm1, %v1575_v39 }
  0xa0   : > { %1510 = vmatmul.msk.bf16.gmra.mxu0 %vm457_vm1, %v1576_v40 }
  0xa1   : > { %1518 = vmatmul.msk.bf16.gmra.mxu1 %vm457_vm1, %v1576_v40 }
  0xa2   : > { %1526 = vmatmul.msk.bf16.gmra.mxu2 %vm457_vm1, %v1576_v40  ;;  %1534 = vmatmul.msk.bf16.gmra.mxu3 %vm457_vm1, %v1576_v40 }
  0xb0   : > { %1511 = vmatmul.msk.bf16.gmra.mxu0 %vm457_vm1, %v1577_v41 }
  0xb1   : > { %1519 = vmatmul.msk.bf16.gmra.mxu1 %vm457_vm1, %v1577_v41 }
  0xb2   : > { %1527 = vmatmul.msk.bf16.gmra.mxu2 %vm457_vm1, %v1577_v41  ;;  %1535 = vmatmul.msk.bf16.gmra.mxu3 %vm457_vm1, %v1577_v41 }
  0xc0   : > { %1512 = vmatmul.msk.bf16.gmra.mxu0 %vm457_vm1, %v1578_v42 }
  0xc1   : > { %1520 = vmatmul.msk.bf16.gmra.mxu1 %vm457_vm1, %v1578_v42 }
  0xc2   : > { %1528 = vmatmul.msk.bf16.gmra.mxu2 %vm457_vm1, %v1578_v42  ;;  %1536 = vmatmul.msk.bf16.gmra.mxu3 %vm457_vm1, %v1578_v42 }
  0xd0   : > { %1513 = vmatmul.msk.bf16.gmra.mxu0 %vm457_vm1, %v1377_v45 }
  0xd1   : > { %1521 = vmatmul.msk.bf16.gmra.mxu1 %vm457_vm1, %v1377_v45 }
  0xd2   : > { %1529 = vmatmul.msk.bf16.gmra.mxu2 %vm457_vm1, %v1377_v45  ;;  %1537 = vmatmul.msk.bf16.gmra.mxu3 %vm457_vm1, %v1377_v45 }
  0xdd   : > { %v504_v46 = vpop.f32.mrf.mxu0 }
  0xde   : > { %691 = vst [vmem:[%s2304_s21] sm:$0xff] %v504_v46  ;;  %v553_v47 = vpop.f32.mrf.mxu1 }
  0xdf   : > { %692 = vst [vmem:[%s2304_s21 + $0x8] sm:$0xff] %v553_v47 }
  0xe5   : > { %v602_v48 = vpop.f32.mrf.mxu2  ;;  %v651_v49 = vpop.f32.mrf.mxu3 }
  0xe6   : > { %693 = vst [vmem:[%s2304_s21 + $0x10] sm:$0xff] %v602_v48  ;;  %v506_v50 = vpop.f32.mrf.mxu0  ;;  %v555_v51 = vpop.f32.mrf.mxu1 }
  0xe7   : > { %694 = vst [vmem:[%s2304_s21 + $0x18] sm:$0xff] %v651_v49 }
  0xe8   : > { %695 = vst [vmem:[%s2304_s21 + $0x20] sm:$0xff] %v506_v50 }
  0xe9   : > { %696 = vst [vmem:[%s2304_s21 + $0x28] sm:$0xff] %v555_v51 }
  0xed   : > { %v604_v52 = vpop.f32.mrf.mxu2  ;;  %v653_v53 = vpop.f32.mrf.mxu3 }
  0xee   : > { %697 = vst [vmem:[%s2304_s21 + $0x30] sm:$0xff] %v604_v52  ;;  %v509_v54 = vpop.f32.mrf.mxu0  ;;  %v558_v55 = vpop.f32.mrf.mxu1 }
  0xef   : > { %698 = vst [vmem:[%s2304_s21 + $0x38] sm:$0xff] %v653_v53 }
  0xf0   : > { %699 = vst [vmem:[%s2304_s21 + $0x40] sm:$0xff] %v509_v54 }
  0xf1   : > { %700 = vst [vmem:[%s2304_s21 + $0x48] sm:$0xff] %v558_v55 }
  0xf5   : > { %v607_v56 = vpop.f32.mrf.mxu2  ;;  %v656_v57 = vpop.f32.mrf.mxu3 }
  0xf6   : > { %701 = vst [vmem:[%s2304_s21 + $0x50] sm:$0xff] %v607_v56  ;;  %v511_v58 = vpop.f32.mrf.mxu0  ;;  %v560_v59 = vpop.f32.mrf.mxu1 }
  0xf7   : > { %702 = vst [vmem:[%s2304_s21 + $0x58] sm:$0xff] %v656_v57 }
  0xf8   : > { %703 = vst [vmem:[%s2304_s21 + $0x60] sm:$0xff] %v511_v58 }
  0xf9   : > { %704 = vst [vmem:[%s2304_s21 + $0x68] sm:$0xff] %v560_v59 }
  0xfd   : > { %v609_v60 = vpop.f32.mrf.mxu2  ;;  %v658_v61 = vpop.f32.mrf.mxu3 }
  0xfe   : > { %705 = vst [vmem:[%s2304_s21 + $0x70] sm:$0xff] %v609_v60  ;;  %v514_v62 = vpop.f32.mrf.mxu0  ;;  %v563_v63 = vpop.f32.mrf.mxu1 }
  0xff   : > { %706 = vst [vmem:[%s2304_s21 + $0x78] sm:$0xff] %v658_v61 }
 0x100   : > { %707 = vst [vmem:[%s2304_s21 + $0x80] sm:$0xff] %v514_v62 }
 0x101   : > { %708 = vst [vmem:[%s2304_s21 + $0x88] sm:$0xff] %v563_v63 }
 0x105   : > { %v612_v0 = vpop.f32.mrf.mxu2  ;;  %v661_v1 = vpop.f32.mrf.mxu3 }
 0x106   : > { %709 = vst [vmem:[%s2304_s21 + $0x90] sm:$0xff] %v612_v0  ;;  %v516_v2 = vpop.f32.mrf.mxu0  ;;  %v565_v3 = vpop.f32.mrf.mxu1 }
 0x107   : > { %710 = vst [vmem:[%s2304_s21 + $0x98] sm:$0xff] %v661_v1 }
 0x108   : > { %711 = vst [vmem:[%s2304_s21 + $0xa0] sm:$0xff] %v516_v2 }
 0x109   : > { %712 = vst [vmem:[%s2304_s21 + $0xa8] sm:$0xff] %v565_v3 }
 0x10d   : > { %v614_v4 = vpop.f32.mrf.mxu2  ;;  %v663_v5 = vpop.f32.mrf.mxu3 }
 0x10e   : > { %713 = vst [vmem:[%s2304_s21 + $0xb0] sm:$0xff] %v614_v4  ;;  %v519_v6 = vpop.f32.mrf.mxu0  ;;  %v568_v7 = vpop.f32.mrf.mxu1 }
 0x10f   : > { %714 = vst [vmem:[%s2304_s21 + $0xb8] sm:$0xff] %v663_v5 }
 0x110   : > { %715 = vst [vmem:[%s2304_s21 + $0xc0] sm:$0xff] %v519_v6 }
 0x111   : > { %716 = vst [vmem:[%s2304_s21 + $0xc8] sm:$0xff] %v568_v7 }
 0x115   : > { %v617_v8 = vpop.f32.mrf.mxu2  ;;  %v666_v9 = vpop.f32.mrf.mxu3 }
 0x116   : > { %717 = vst [vmem:[%s2304_s21 + $0xd0] sm:$0xff] %v617_v8  ;;  %v521_v10 = vpop.f32.mrf.mxu0  ;;  %v570_v11 = vpop.f32.mrf.mxu1 }
 0x117   : > { %718 = vst [vmem:[%s2304_s21 + $0xd8] sm:$0xff] %v666_v9 }
 0x118   : > { %719 = vst [vmem:[%s2304_s21 + $0xe0] sm:$0xff] %v521_v10 }
 0x119   : > { %720 = vst [vmem:[%s2304_s21 + $0xe8] sm:$0xff] %v570_v11 }
 0x11d   : > { %v619_v12 = vpop.f32.mrf.mxu2  ;;  %v668_v13 = vpop.f32.mrf.mxu3 }
 0x11e   : > { %721 = vst [vmem:[%s2304_s21 + $0xf0] sm:$0xff] %v619_v12  ;;  %v524_v14 = vpop.f32.mrf.mxu0  ;;  %v573_v15 = vpop.f32.mrf.mxu1 }
 0x11f   : > { %722 = vst [vmem:[%s2304_s21 + $0xf8] sm:$0xff] %v668_v13 }
 0x120   : > { %723 = vst [vmem:[%s2304_s21 + $0x100] sm:$0xff] %v524_v14 }
 0x121   : > { %724 = vst [vmem:[%s2304_s21 + $0x108] sm:$0xff] %v573_v15 }
 0x125   : > { %v622_v16 = vpop.f32.mrf.mxu2  ;;  %v671_v17 = vpop.f32.mrf.mxu3 }
 0x126   : > { %725 = vst [vmem:[%s2304_s21 + $0x110] sm:$0xff] %v622_v16  ;;  %v526_v18 = vpop.f32.mrf.mxu0  ;;  %v575_v19 = vpop.f32.mrf.mxu1 }
 0x127   : > { %726 = vst [vmem:[%s2304_s21 + $0x118] sm:$0xff] %v671_v17 }
 0x128   : > { %727 = vst [vmem:[%s2304_s21 + $0x120] sm:$0xff] %v526_v18 }
 0x129   : > { %728 = vst [vmem:[%s2304_s21 + $0x128] sm:$0xff] %v575_v19 }
 0x12d   : > { %v624_v20 = vpop.f32.mrf.mxu2  ;;  %v673_v21 = vpop.f32.mrf.mxu3 }
 0x12e   : > { %729 = vst [vmem:[%s2304_s21 + $0x130] sm:$0xff] %v624_v20  ;;  %v529_v22 = vpop.f32.mrf.mxu0  ;;  %v578_v23 = vpop.f32.mrf.mxu1 }
 0x12f   : > { %730 = vst [vmem:[%s2304_s21 + $0x138] sm:$0xff] %v673_v21 }
 0x130   : > { %731 = vst [vmem:[%s2304_s21 + $0x140] sm:$0xff] %v529_v22 }
 0x131   : > { %732 = vst [vmem:[%s2304_s21 + $0x148] sm:$0xff] %v578_v23 }
 0x135   : > { %v627_v24 = vpop.f32.mrf.mxu2  ;;  %v676_v25 = vpop.f32.mrf.mxu3 }
 0x136   : > { %733 = vst [vmem:[%s2304_s21 + $0x150] sm:$0xff] %v627_v24  ;;  %v531_v26 = vpop.f32.mrf.mxu0  ;;  %v580_v27 = vpop.f32.mrf.mxu1 }
 0x137   : > { %734 = vst [vmem:[%s2304_s21 + $0x158] sm:$0xff] %v676_v25 }
 0x138   : > { %735 = vst [vmem:[%s2304_s21 + $0x160] sm:$0xff] %v531_v26 }
 0x139   : > { %736 = vst [vmem:[%s2304_s21 + $0x168] sm:$0xff] %v580_v27 }
 0x13d   : > { %v629_v28 = vpop.f32.mrf.mxu2  ;;  %v678_v29 = vpop.f32.mrf.mxu3 }
 0x13e   : > { %737 = vst [vmem:[%s2304_s21 + $0x170] sm:$0xff] %v629_v28  ;;  %v534_v30 = vpop.f32.mrf.mxu0  ;;  %v583_v31 = vpop.f32.mrf.mxu1 }
 0x13f   : > { %738 = vst [vmem:[%s2304_s21 + $0x178] sm:$0xff] %v678_v29 }
 0x140   : > { %739 = vst [vmem:[%s2304_s21 + $0x180] sm:$0xff] %v534_v30 }
 0x141   : > { %740 = vst [vmem:[%s2304_s21 + $0x188] sm:$0xff] %v583_v31 }
 0x145   : > { %v632_v32 = vpop.f32.mrf.mxu2  ;;  %v681_v33 = vpop.f32.mrf.mxu3 }
 0x146   : > { %741 = vst [vmem:[%s2304_s21 + $0x190] sm:$0xff] %v632_v32  ;;  %v536_v34 = vpop.f32.mrf.mxu0  ;;  %v585_v35 = vpop.f32.mrf.mxu1 }
 0x147   : > { %742 = vst [vmem:[%s2304_s21 + $0x198] sm:$0xff] %v681_v33 }
 0x148   : > { %743 = vst [vmem:[%s2304_s21 + $0x1a0] sm:$0xff] %v536_v34 }
 0x149   : > { %744 = vst [vmem:[%s2304_s21 + $0x1a8] sm:$0xff] %v585_v35 }
 0x14d   : > { %v634_v36 = vpop.f32.mrf.mxu2  ;;  %v683_v37 = vpop.f32.mrf.mxu3 }
 0x14e   : > { %745 = vst [vmem:[%s2304_s21 + $0x1b0] sm:$0xff] %v634_v36  ;;  %v539_v38 = vpop.f32.mrf.mxu0  ;;  %v588_v39 = vpop.f32.mrf.mxu1 }
 0x14f   : > { %746 = vst [vmem:[%s2304_s21 + $0x1b8] sm:$0xff] %v683_v37 }
 0x150   : > { %747 = vst [vmem:[%s2304_s21 + $0x1c0] sm:$0xff] %v539_v38 }
 0x151   : > { %748 = vst [vmem:[%s2304_s21 + $0x1c8] sm:$0xff] %v588_v39 }
 0x155   : > { %v637_v40 = vpop.f32.mrf.mxu2  ;;  %v686_v41 = vpop.f32.mrf.mxu3 }
 0x156   : > { %749 = vst [vmem:[%s2304_s21 + $0x1d0] sm:$0xff] %v637_v40  ;;  %v541_v42 = vpop.f32.mrf.mxu0  ;;  %v590_v43 = vpop.f32.mrf.mxu1 }
 0x157   : > { %750 = vst [vmem:[%s2304_s21 + $0x1d8] sm:$0xff] %v686_v41 }
 0x158   : > { %751 = vst [vmem:[%s2304_s21 + $0x1e0] sm:$0x3] %v541_v42 }
 0x159   : > { %752 = vst [vmem:[%s2304_s21 + $0x1e8] sm:$0x3] %v590_v43 }
 0x15b   : > { %761 = sbr.rel (!%p2144_p10) target bundleno = 548 (0x224), region = 40 }
 0x15d   : > { %v639_v44 = vpop.f32.mrf.mxu2  ;;  %v688_v45 = vpop.f32.mrf.mxu3 }
 0x15e   : > { %753 = vst [vmem:[%s2304_s21 + $0x1f0] sm:$0x3] %v639_v44 }
 0x15f   : > { %754 = vst [vmem:[%s2304_s21 + $0x1f8] sm:$0x3] %v688_v45 }
 0x160   : > { %s2977_s28 = smov (!%p764_p5, %s763_s28), 4 }
 0x161   : > { %s1540_s4 = sshll.u32 %s2977_s28, 7  ;;  %s2379_s5 = sshll.u32 %s2977_s28, 3 }
 0x162   : > { %p1544_p8 = scmp.eq.s32.totalorder %s1540_s4, 0 }
 0x163   : > { %p776_p12 = scmp.lt.u32.totalorder (!%p1544_p8), %s2379_s5, 8 }
 0x164   : > { %775 = sbr.rel (%p1544_p8) target bundleno = 548 (0x224), region = 44 }
 0x169   : > { %779 = sbr.rel (%p776_p12) target bundleno = 524 (0x20c), region = 48  ;;  %s2383_s23 = sand.u32 (!%p776_p12), 7, %s2379_s5  }
 0x16a   : > { %p826_p10 = scmp.eq.s32.totalorder (!%p776_p12), %s2383_s23, 0  ;;  %p1545_p13 = scmp.ne.s32.totalorder (!%p776_p12), %s2383_s23, 0 }
 0x16e   : > { %829 = sbr.rel (%p1545_p13) target bundleno = 435 (0x1b3), region = 63  ;;  %s830_s12 = sshrl.u32 (!%p1545_p13), %s2379_s5, 3 }
 0x16f   : > { %s2390_s6 = sshrl.u32 (!%p1545_p13), %s830_s12, 1 }
 0x170   : > { %p1546_p0 = scmp.le.s32.totalorder (!%p1545_p13), %s2390_s6, 0 }
 0x173   : > { %1237 = sbr.rel (%p1546_p0) target bundleno = 409 (0x199), region = 151  ;;  %s2947_s9 = smov (!%p1546_p0), %s2377_s3 }
 0x174   : > { %s2948_s8 = smov (!%p1546_p0), %s2304_s21  ;;  %s2399_s15 = smov (!%p1546_p0), 0  }
 0x175   : > { %s2401_s24 = smov (!%p1546_p0), 0  }
 0x178 LB: >> { %v841_v46 = vld [vmem:[%s2006_s8] sm:$0xff]  ;;  %v843_v47 = vld [vmem:[%s2006_s8 + $0x8] sm:$0xff]  ;;  %s905_s19 = sadd.s32 1, %s2010_s15  ;;  %s835_s24 = sadd.s32 1, %s2014_s24   ;;  %s2014_s24 = sphi %s2401_s24, %s835_s24   ;;  %s2010_s15 = sphi %s2399_s15, %s2951_s15   ;;  %s2006_s8 = sphi %s2948_s8, %s2950_s8   ;;  %s2002_s9 = sphi %s2947_s9, %s2949_s9  }
 0x179   : >> { %v845_v48 = vld [vmem:[%s2006_s8 + $0x20] sm:$0xff]  ;;  %842 = vst [vmem:[%s2002_s9] sm:$0xff] %v841_v46  ;;  %v847_v49 = vld [vmem:[%s2006_s8 + $0x28] sm:$0xff]  ;;  %p906_p1 = scmp.ge.s32.totalorder %s905_s19, %s2390_s6  ;;  %p834_p2 = scmp.ge.s32.totalorder %s835_s24, %s2390_s6 }
 0x17a   : >> { %844 = vst [vmem:[%s2002_s9 + $0x8] sm:$0xff] %v843_v47  ;;  %v849_v50 = vld [vmem:[%s2006_s8 + $0x40] sm:$0xff]  ;;  %v851_v51 = vld [vmem:[%s2006_s8 + $0x48] sm:$0xff] }
 0x17b   : >> { %846 = vst [vmem:[%s2002_s9 + $0x38] sm:$0xff] %v845_v48  ;;  %s2979_s19 = smov (%p906_p1, %s905_s19), 0  ;;  %v853_v52 = vld [vmem:[%s2006_s8 + $0x60] sm:$0xff]  ;;  %v855_v53 = vld [vmem:[%s2006_s8 + $0x68] sm:$0xff] }
 0x17c   : >> { %848 = vst [vmem:[%s2002_s9 + $0x40] sm:$0xff] %v847_v49  ;;  %s1547_s7 = sshll.u32 %s2979_s19, 4  ;;  %v857_v54 = vld [vmem:[%s2006_s8 + $0x80] sm:$0xff]  ;;  %v859_v55 = vld [vmem:[%s2006_s8 + $0x88] sm:$0xff]  ;;  %s2951_s15 = smov %s2979_s19 }
 0x17d   : >> { %850 = vst [vmem:[%s2002_s9 + $0x70] sm:$0xff] %v849_v50  ;;  %s2433_s25 = scalar_lea.vmem %s2304_s21, %s1547_s7 [#allocation6]   ;;  %s2436_s18 = scalar_lea.vmem %s2377_s3, %s1547_s7   ;;  %v861_v56 = vld [vmem:[%s2006_s8 + $0xa0] sm:$0xff]  ;;  %v863_v57 = vld [vmem:[%s2006_s8 + $0xa8] sm:$0xff] }
 0x17e   : >> { %852 = vst [vmem:[%s2002_s9 + $0x78] sm:$0xff] %v851_v51  ;;  %v865_v58 = vld [vmem:[%s2006_s8 + $0xc0] sm:$0xff]  ;;  %v867_v59 = vld [vmem:[%s2006_s8 + $0xc8] sm:$0xff] }
 0x17f   : >> { %854 = vst [vmem:[%s2002_s9 + $0xa8] sm:$0xff] %v853_v52  ;;  %v869_v60 = vld [vmem:[%s2006_s8 + $0xe0] sm:$0xff]  ;;  %v871_v61 = vld [vmem:[%s2006_s8 + $0xe8] sm:$0xff] }
 0x180   : >> { %856 = vst [vmem:[%s2002_s9 + $0xb0] sm:$0xff] %v855_v53  ;;  %v873_v62 = vld [vmem:[%s2006_s8 + $0x100] sm:$0xff]  ;;  %v875_v63 = vld [vmem:[%s2006_s8 + $0x108] sm:$0xff] }
 0x181   : >> { %858 = vst [vmem:[%s2002_s9 + $0xe0] sm:$0xff] %v857_v54  ;;  %v877_v0 = vld [vmem:[%s2006_s8 + $0x120] sm:$0xff]  ;;  %v879_v1 = vld [vmem:[%s2006_s8 + $0x128] sm:$0xff] }
 0x182   : >> { %860 = vst [vmem:[%s2002_s9 + $0xe8] sm:$0xff] %v859_v55  ;;  %v881_v2 = vld [vmem:[%s2006_s8 + $0x140] sm:$0xff]  ;;  %v883_v3 = vld [vmem:[%s2006_s8 + $0x148] sm:$0xff] }
 0x183   : >> { %862 = vst [vmem:[%s2002_s9 + $0x118] sm:$0xff] %v861_v56  ;;  %v885_v4 = vld [vmem:[%s2006_s8 + $0x160] sm:$0xff]  ;;  %v887_v5 = vld [vmem:[%s2006_s8 + $0x168] sm:$0xff] }
 0x184   : >> { %864 = vst [vmem:[%s2002_s9 + $0x120] sm:$0xff] %v863_v57  ;;  %v889_v6 = vld [vmem:[%s2006_s8 + $0x180] sm:$0xff]  ;;  %v891_v7 = vld [vmem:[%s2006_s8 + $0x188] sm:$0xff] }
 0x185   : >> { %866 = vst [vmem:[%s2002_s9 + $0x150] sm:$0xff] %v865_v58  ;;  %v893_v8 = vld [vmem:[%s2006_s8 + $0x1a0] sm:$0xff]  ;;  %v895_v9 = vld [vmem:[%s2006_s8 + $0x1a8] sm:$0xff] }
 0x186   : >> { %868 = vst [vmem:[%s2002_s9 + $0x158] sm:$0xff] %v867_v59  ;;  %v897_v10 = vld [vmem:[%s2006_s8 + $0x1c0] sm:$0xff]  ;;  %v899_v11 = vld [vmem:[%s2006_s8 + $0x1c8] sm:$0xff] }
 0x187   : >> { %870 = vst [vmem:[%s2002_s9 + $0x188] sm:$0xff] %v869_v60  ;;  %v901_v12 = vld [vmem:[%s2006_s8 + $0x1e0] sm:$0xff]  ;;  %v903_v13 = vld [vmem:[%s2006_s8 + $0x1e8] sm:$0xff]  ;;  %s2950_s8 = smov %s2433_s25 }
 0x188   : >> { %872 = vst [vmem:[%s2002_s9 + $0x190] sm:$0xff] %v871_v61 }
 0x189   : >> { %874 = vst [vmem:[%s2002_s9 + $0x1c0] sm:$0xff] %v873_v62 }
 0x18a   : >> { %876 = vst [vmem:[%s2002_s9 + $0x1c8] sm:$0xff] %v875_v63 }
 0x18b   : >> { %878 = vst [vmem:[%s2002_s9 + $0x1f8] sm:$0xff] %v877_v0 }
 0x18c   : >> { %880 = vst [vmem:[%s2002_s9 + $0x200] sm:$0xff] %v879_v1 }
 0x18d   : >> { %882 = vst [vmem:[%s2002_s9 + $0x230] sm:$0xff] %v881_v2 }
 0x18e   : >> { %884 = vst [vmem:[%s2002_s9 + $0x238] sm:$0xff] %v883_v3 }
 0x18f   : >> { %886 = vst [vmem:[%s2002_s9 + $0x268] sm:$0xff] %v885_v4 }
 0x190   : >> { %888 = vst [vmem:[%s2002_s9 + $0x270] sm:$0xff] %v887_v5 }
 0x191   : >> { %890 = vst [vmem:[%s2002_s9 + $0x2a0] sm:$0xff] %v889_v6 }
 0x192   : >> { %892 = vst [vmem:[%s2002_s9 + $0x2a8] sm:$0xff] %v891_v7 }
 0x193   : >> { %894 = vst [vmem:[%s2002_s9 + $0x2d8] sm:$0xff] %v893_v8 }
 0x194   : >> { %896 = vst [vmem:[%s2002_s9 + $0x2e0] sm:$0xff] %v895_v9  ;;  %837 = sbr.rel (!%p834_p2) target bundleno = 376 (0x178), region = 157 }
 0x195   : >> { %898 = vst [vmem:[%s2002_s9 + $0x310] sm:$0xff] %v897_v10 }
 0x196   : >> { %900 = vst [vmem:[%s2002_s9 + $0x318] sm:$0xff] %v899_v11 }
 0x197   : >> { %902 = vst [vmem:[%s2002_s9 + $0x348] sm:$0xff] %v901_v12 }
 0x198   : >> { %904 = vst [vmem:[%s2002_s9 + $0x350] sm:$0xff] %v903_v13  ;;  %s2949_s9 = smov %s2436_s18 }
 0x199 PF: > { %s2502_s17 = sand.u32 1, %s830_s12   ;;  %s1613_s20 = sshll.u32 %s2390_s6, 4 }
 0x19a   : > { %s2506_s27 = scalar_lea.vmem %s2304_s21, %s1613_s20 [#allocation6]   ;;  %s2509_s26 = scalar_lea.vmem %s2377_s3, %s1613_s20  }
 0x19b   : > { %p1552_p3 = scmp.le.s32.totalorder %s2502_s17, 0 }
 0x19c   : > { %s2952_s28 = smov (!%p1552_p3), %s2509_s26  ;;  %s2953_s29 = smov (!%p1552_p3), %s2506_s27 }
 0x19d   : > { %1251 = sbr.rel (%p1552_p3) target bundleno = 435 (0x1b3), region = 162  ;;  %s2518_s30 = smov (!%p1552_p3), 0  }
 0x19e   : > { %s2520_s4 = smov (!%p1552_p3), 0  }
 0x1a2 LB: >> { %v928_v14 = vld [vmem:[%s2022_s29] sm:$0xff]  ;;  %s960_s12 = sadd.s32 1, %s2026_s30  ;;  %s922_s4 = sadd.s32 1, %s2030_s4   ;;  %s2030_s4 = sphi %s2520_s4, %s922_s4   ;;  %s2026_s30 = sphi %s2518_s30, %s2956_s30   ;;  %s2022_s29 = sphi %s2953_s29, %s2955_s29   ;;  %s2018_s28 = sphi %s2952_s28, %s2954_s28  }
 0x1a3   : >> { %v930_v15 = vld [vmem:[%s2022_s29 + $0x20] sm:$0xff]  ;;  %929 = vst [vmem:[%s2018_s28] sm:$0xff] %v928_v14  ;;  %p961_p4 = scmp.ge.s32.totalorder %s960_s12, %s2502_s17  ;;  %p921_p6 = scmp.ge.s32.totalorder %s922_s4, %s2502_s17 }
 0x1a4   : >> { %v932_v16 = vld [vmem:[%s2022_s29 + $0x40] sm:$0xff]  ;;  %931 = vst [vmem:[%s2018_s28 + $0x38] sm:$0xff] %v930_v15 }
 0x1a5   : >> { %v934_v17 = vld [vmem:[%s2022_s29 + $0x60] sm:$0xff]  ;;  %933 = vst [vmem:[%s2018_s28 + $0x70] sm:$0xff] %v932_v16  ;;  %s2981_s12 = smov (%p961_p4, %s960_s12), 0 }
 0x1a6   : >> { %v936_v18 = vld [vmem:[%s2022_s29 + $0x80] sm:$0xff]  ;;  %935 = vst [vmem:[%s2018_s28 + $0xa8] sm:$0xff] %v934_v17  ;;  %s1553_s6 = sshll.u32 %s2981_s12, 3  ;;  %s2956_s30 = smov %s2981_s12 }
 0x1a7   : >> { %v938_v19 = vld [vmem:[%s2022_s29 + $0xa0] sm:$0xff]  ;;  %937 = vst [vmem:[%s2018_s28 + $0xe0] sm:$0xff] %v936_v18  ;;  %s965_s9 = scalar_lea.vmem %s2506_s27, %s1553_s6 [#allocation6]   ;;  %s966_s8 = scalar_lea.vmem %s2509_s26, %s1553_s6  }
 0x1a8   : >> { %v940_v20 = vld [vmem:[%s2022_s29 + $0xc0] sm:$0xff]  ;;  %939 = vst [vmem:[%s2018_s28 + $0x118] sm:$0xff] %v938_v19 }
 0x1a9   : >> { %v942_v21 = vld [vmem:[%s2022_s29 + $0xe0] sm:$0xff]  ;;  %941 = vst [vmem:[%s2018_s28 + $0x150] sm:$0xff] %v940_v20 }
 0x1aa   : >> { %v944_v22 = vld [vmem:[%s2022_s29 + $0x100] sm:$0xff]  ;;  %943 = vst [vmem:[%s2018_s28 + $0x188] sm:$0xff] %v942_v21 }
 0x1ab   : >> { %v946_v23 = vld [vmem:[%s2022_s29 + $0x120] sm:$0xff]  ;;  %945 = vst [vmem:[%s2018_s28 + $0x1c0] sm:$0xff] %v944_v22 }
 0x1ac   : >> { %v948_v24 = vld [vmem:[%s2022_s29 + $0x140] sm:$0xff]  ;;  %947 = vst [vmem:[%s2018_s28 + $0x1f8] sm:$0xff] %v946_v23 }
 0x1ad   : >> { %v950_v25 = vld [vmem:[%s2022_s29 + $0x160] sm:$0xff]  ;;  %949 = vst [vmem:[%s2018_s28 + $0x230] sm:$0xff] %v948_v24 }
 0x1ae   : >> { %v952_v26 = vld [vmem:[%s2022_s29 + $0x180] sm:$0xff]  ;;  %951 = vst [vmem:[%s2018_s28 + $0x268] sm:$0xff] %v950_v25  ;;  %924 = sbr.rel (!%p921_p6) target bundleno = 418 (0x1a2), region = 168 }
 0x1af   : >> { %v954_v27 = vld [vmem:[%s2022_s29 + $0x1a0] sm:$0xff]  ;;  %953 = vst [vmem:[%s2018_s28 + $0x2a0] sm:$0xff] %v952_v26 }
 0x1b0   : >> { %v956_v28 = vld [vmem:[%s2022_s29 + $0x1c0] sm:$0xff]  ;;  %955 = vst [vmem:[%s2018_s28 + $0x2d8] sm:$0xff] %v954_v27 }
 0x1b1   : >> { %v958_v29 = vld [vmem:[%s2022_s29 + $0x1e0] sm:$0xff]  ;;  %957 = vst [vmem:[%s2018_s28 + $0x310] sm:$0xff] %v956_v28  ;;  %s2955_s29 = smov %s965_s9 }
 0x1b2   : >> { %959 = vst [vmem:[%s2018_s28 + $0x348] sm:$0xff] %v958_v29  ;;  %s2954_s28 = smov %s966_s8 }
 0x1b3 PF: > { %969 = sbr.rel (%p826_p10) target bundleno = 524 (0x20c), region = 81  ;;  %s971_s15 = ssub.s32 (!%p826_p10), %s2379_s5, %s2383_s23 }
 0x1b4   : > { %s975_s24 = sshrl.u32 (!%p826_p10), %s2379_s5, 3  ;;  %s2587_s19 = scalar_lea.vmem (!%p826_p10), %s2304_s21, %s971_s15 [#allocation6] }
 0x1b5   : > { %s2590_s7 = scalar_lea.vmem (!%p826_p10), %s2377_s3, %s971_s15  ;;  %s2594_s25 = sshrl.u32 (!%p826_p10), %s975_s24, 1 }
 0x1b6   : > { %p1555_p7 = scmp.le.s32.totalorder (!%p826_p10), %s2594_s25, 0 }
 0x1b8   : > { %1265 = sbr.rel (%p1555_p7) target bundleno = 478 (0x1de), region = 173  ;;  %s2957_s18 = smov (!%p1555_p7), %s2377_s3 }
 0x1b9   : > { %s2958_s17 = smov (!%p1555_p7), %s2304_s21  ;;  %s2603_s20 = smov (!%p1555_p7), 0  }
 0x1ba   : > { %s2605_s27 = smov (!%p1555_p7), 0  }
 0x1bd LB: >> { %v986_v30 = vld [vmem:[%s2038_s17] sm:$0xff]  ;;  %v988_v31 = vld [vmem:[%s2038_s17 + $0x8] sm:$0xff]  ;;  %s1050_s26 = sadd.s32 1, %s2042_s20  ;;  %s980_s27 = sadd.s32 1, %s2046_s27   ;;  %s2046_s27 = sphi %s2605_s27, %s980_s27   ;;  %s2042_s20 = sphi %s2603_s20, %s2961_s20   ;;  %s2038_s17 = sphi %s2958_s17, %s2960_s17   ;;  %s2034_s18 = sphi %s2957_s18, %s2959_s18  }
 0x1be   : >> { %v990_v32 = vld [vmem:[%s2038_s17 + $0x20] sm:$0xff]  ;;  %987 = vst [vmem:[%s2034_s18] sm:$0xff] %v986_v30  ;;  %v992_v33 = vld [vmem:[%s2038_s17 + $0x28] sm:$0xff]  ;;  %p1051_p9 = scmp.ge.s32.totalorder %s1050_s26, %s2594_s25  ;;  %p979_p11 = scmp.ge.s32.totalorder %s980_s27, %s2594_s25 }
 0x1bf   : >> { %989 = vst [vmem:[%s2034_s18 + $0x8] sm:$0xff] %v988_v31  ;;  %v994_v34 = vld [vmem:[%s2038_s17 + $0x40] sm:$0xff]  ;;  %v996_v35 = vld [vmem:[%s2038_s17 + $0x48] sm:$0xff] }
 0x1c0   : >> { %991 = vst [vmem:[%s2034_s18 + $0x38] sm:$0xff] %v990_v32  ;;  %s2983_s26 = smov (%p1051_p9, %s1050_s26), 0  ;;  %v998_v36 = vld [vmem:[%s2038_s17 + $0x60] sm:$0xff]  ;;  %v1000_v37 = vld [vmem:[%s2038_s17 + $0x68] sm:$0xff] }
 0x1c1   : >> { %993 = vst [vmem:[%s2034_s18 + $0x40] sm:$0xff] %v992_v33  ;;  %s1556_s28 = sshll.u32 %s2983_s26, 4  ;;  %v1002_v38 = vld [vmem:[%s2038_s17 + $0x80] sm:$0xff]  ;;  %v1004_v39 = vld [vmem:[%s2038_s17 + $0x88] sm:$0xff]  ;;  %s2961_s20 = smov %s2983_s26 }
 0x1c2   : >> { %995 = vst [vmem:[%s2034_s18 + $0x70] sm:$0xff] %v994_v34  ;;  %s2637_s29 = scalar_lea.vmem %s2304_s21, %s1556_s28 [#allocation6]   ;;  %s2640_s30 = scalar_lea.vmem %s2377_s3, %s1556_s28   ;;  %v1006_v40 = vld [vmem:[%s2038_s17 + $0xa0] sm:$0xff]  ;;  %v1008_v41 = vld [vmem:[%s2038_s17 + $0xa8] sm:$0xff] }
 0x1c3   : >> { %997 = vst [vmem:[%s2034_s18 + $0x78] sm:$0xff] %v996_v35  ;;  %v1010_v42 = vld [vmem:[%s2038_s17 + $0xc0] sm:$0xff]  ;;  %v1012_v43 = vld [vmem:[%s2038_s17 + $0xc8] sm:$0xff] }
 0x1c4   : >> { %999 = vst [vmem:[%s2034_s18 + $0xa8] sm:$0xff] %v998_v36  ;;  %v1014_v44 = vld [vmem:[%s2038_s17 + $0xe0] sm:$0xff]  ;;  %v1016_v45 = vld [vmem:[%s2038_s17 + $0xe8] sm:$0xff] }
 0x1c5   : >> { %1001 = vst [vmem:[%s2034_s18 + $0xb0] sm:$0xff] %v1000_v37  ;;  %v1018_v46 = vld [vmem:[%s2038_s17 + $0x100] sm:$0xff]  ;;  %v1020_v47 = vld [vmem:[%s2038_s17 + $0x108] sm:$0xff] }
 0x1c6   : >> { %1003 = vst [vmem:[%s2034_s18 + $0xe0] sm:$0xff] %v1002_v38  ;;  %v1022_v48 = vld [vmem:[%s2038_s17 + $0x120] sm:$0xff]  ;;  %v1024_v49 = vld [vmem:[%s2038_s17 + $0x128] sm:$0xff] }
 0x1c7   : >> { %1005 = vst [vmem:[%s2034_s18 + $0xe8] sm:$0xff] %v1004_v39  ;;  %v1026_v50 = vld [vmem:[%s2038_s17 + $0x140] sm:$0xff]  ;;  %v1028_v51 = vld [vmem:[%s2038_s17 + $0x148] sm:$0xff] }
 0x1c8   : >> { %1007 = vst [vmem:[%s2034_s18 + $0x118] sm:$0xff] %v1006_v40  ;;  %v1030_v52 = vld [vmem:[%s2038_s17 + $0x160] sm:$0xff]  ;;  %v1032_v53 = vld [vmem:[%s2038_s17 + $0x168] sm:$0xff] }
 0x1c9   : >> { %1009 = vst [vmem:[%s2034_s18 + $0x120] sm:$0xff] %v1008_v41  ;;  %v1034_v54 = vld [vmem:[%s2038_s17 + $0x180] sm:$0xff]  ;;  %v1036_v55 = vld [vmem:[%s2038_s17 + $0x188] sm:$0xff] }
 0x1ca   : >> { %1011 = vst [vmem:[%s2034_s18 + $0x150] sm:$0xff] %v1010_v42  ;;  %v1038_v56 = vld [vmem:[%s2038_s17 + $0x1a0] sm:$0xff]  ;;  %v1040_v57 = vld [vmem:[%s2038_s17 + $0x1a8] sm:$0xff] }
 0x1cb   : >> { %1013 = vst [vmem:[%s2034_s18 + $0x158] sm:$0xff] %v1012_v43  ;;  %v1042_v58 = vld [vmem:[%s2038_s17 + $0x1c0] sm:$0xff]  ;;  %v1044_v59 = vld [vmem:[%s2038_s17 + $0x1c8] sm:$0xff] }
 0x1cc   : >> { %1015 = vst [vmem:[%s2034_s18 + $0x188] sm:$0xff] %v1014_v44  ;;  %v1046_v60 = vld [vmem:[%s2038_s17 + $0x1e0] sm:$0xff]  ;;  %v1048_v61 = vld [vmem:[%s2038_s17 + $0x1e8] sm:$0xff]  ;;  %s2960_s17 = smov %s2637_s29 }
 0x1cd   : >> { %1017 = vst [vmem:[%s2034_s18 + $0x190] sm:$0xff] %v1016_v45 }
 0x1ce   : >> { %1019 = vst [vmem:[%s2034_s18 + $0x1c0] sm:$0xff] %v1018_v46 }
 0x1cf   : >> { %1021 = vst [vmem:[%s2034_s18 + $0x1c8] sm:$0xff] %v1020_v47 }
 0x1d0   : >> { %1023 = vst [vmem:[%s2034_s18 + $0x1f8] sm:$0xff] %v1022_v48 }
 0x1d1   : >> { %1025 = vst [vmem:[%s2034_s18 + $0x200] sm:$0xff] %v1024_v49 }
 0x1d2   : >> { %1027 = vst [vmem:[%s2034_s18 + $0x230] sm:$0xff] %v1026_v50 }
 0x1d3   : >> { %1029 = vst [vmem:[%s2034_s18 + $0x238] sm:$0xff] %v1028_v51 }
 0x1d4   : >> { %1031 = vst [vmem:[%s2034_s18 + $0x268] sm:$0xff] %v1030_v52 }
 0x1d5   : >> { %1033 = vst [vmem:[%s2034_s18 + $0x270] sm:$0xff] %v1032_v53 }
 0x1d6   : >> { %1035 = vst [vmem:[%s2034_s18 + $0x2a0] sm:$0xff] %v1034_v54 }
 0x1d7   : >> { %1037 = vst [vmem:[%s2034_s18 + $0x2a8] sm:$0xff] %v1036_v55 }
 0x1d8   : >> { %1039 = vst [vmem:[%s2034_s18 + $0x2d8] sm:$0xff] %v1038_v56 }
 0x1d9   : >> { %1041 = vst [vmem:[%s2034_s18 + $0x2e0] sm:$0xff] %v1040_v57  ;;  %982 = sbr.rel (!%p979_p11) target bundleno = 445 (0x1bd), region = 179 }
 0x1da   : >> { %1043 = vst [vmem:[%s2034_s18 + $0x310] sm:$0xff] %v1042_v58 }
 0x1db   : >> { %1045 = vst [vmem:[%s2034_s18 + $0x318] sm:$0xff] %v1044_v59 }
 0x1dc   : >> { %1047 = vst [vmem:[%s2034_s18 + $0x348] sm:$0xff] %v1046_v60 }
 0x1dd   : >> { %1049 = vst [vmem:[%s2034_s18 + $0x350] sm:$0xff] %v1048_v61  ;;  %s2959_s18 = smov %s2640_s30 }
 0x1de PF: > { %s2706_s4 = sand.u32 1, %s975_s24   ;;  %s1615_s12 = sshll.u32 %s2594_s25, 4 }
 0x1df   : > { %s2710_s6 = scalar_lea.vmem %s2304_s21, %s1615_s12 [#allocation6]   ;;  %s2713_s9 = scalar_lea.vmem %s2377_s3, %s1615_s12  }
 0x1e0   : > { %p1561_p5 = scmp.le.s32.totalorder %s2706_s4, 0 }
 0x1e1   : > { %s2962_s8 = smov (!%p1561_p5), %s2713_s9  ;;  %s2963_s15 = smov (!%p1561_p5), %s2710_s6 }
 0x1e2   : > { %1279 = sbr.rel (%p1561_p5) target bundleno = 504 (0x1f8), region = 184  ;;  %s2722_s18 = smov (!%p1561_p5), 0  }
 0x1e3   : > { %s2724_s17 = smov (!%p1561_p5), 0  }
 0x1e7 LB: >> { %v1073_v62 = vld [vmem:[%s2054_s15] sm:$0xff]  ;;  %s1105_s24 = sadd.s32 1, %s2058_s18  ;;  %s1067_s17 = sadd.s32 1, %s2062_s17   ;;  %s2062_s17 = sphi %s2724_s17, %s1067_s17   ;;  %s2058_s18 = sphi %s2722_s18, %s2966_s18   ;;  %s2054_s15 = sphi %s2963_s15, %s2965_s15   ;;  %s2050_s8 = sphi %s2962_s8, %s2964_s8  }
 0x1e8   : >> { %v1075_v63 = vld [vmem:[%s2054_s15 + $0x20] sm:$0xff]  ;;  %1074 = vst [vmem:[%s2050_s8] sm:$0xff] %v1073_v62  ;;  %p1106_p8 = scmp.ge.s32.totalorder %s1105_s24, %s2706_s4  ;;  %p1066_p12 = scmp.ge.s32.totalorder %s1067_s17, %s2706_s4 }
 0x1e9   : >> { %v1077_v0 = vld [vmem:[%s2054_s15 + $0x40] sm:$0xff]  ;;  %1076 = vst [vmem:[%s2050_s8 + $0x38] sm:$0xff] %v1075_v63 }
 0x1ea   : >> { %v1079_v1 = vld [vmem:[%s2054_s15 + $0x60] sm:$0xff]  ;;  %1078 = vst [vmem:[%s2050_s8 + $0x70] sm:$0xff] %v1077_v0  ;;  %s2985_s24 = smov (%p1106_p8, %s1105_s24), 0 }
 0x1eb   : >> { %v1081_v2 = vld [vmem:[%s2054_s15 + $0x80] sm:$0xff]  ;;  %1080 = vst [vmem:[%s2050_s8 + $0xa8] sm:$0xff] %v1079_v1  ;;  %s1562_s25 = sshll.u32 %s2985_s24, 3  ;;  %s2966_s18 = smov %s2985_s24 }
 0x1ec   : >> { %v1083_v3 = vld [vmem:[%s2054_s15 + $0xa0] sm:$0xff]  ;;  %1082 = vst [vmem:[%s2050_s8 + $0xe0] sm:$0xff] %v1081_v2  ;;  %s1110_s20 = scalar_lea.vmem %s2710_s6, %s1562_s25 [#allocation6]   ;;  %s1111_s27 = scalar_lea.vmem %s2713_s9, %s1562_s25  }
 0x1ed   : >> { %v1085_v4 = vld [vmem:[%s2054_s15 + $0xc0] sm:$0xff]  ;;  %1084 = vst [vmem:[%s2050_s8 + $0x118] sm:$0xff] %v1083_v3 }
 0x1ee   : >> { %v1087_v5 = vld [vmem:[%s2054_s15 + $0xe0] sm:$0xff]  ;;  %1086 = vst [vmem:[%s2050_s8 + $0x150] sm:$0xff] %v1085_v4 }
 0x1ef   : >> { %v1089_v6 = vld [vmem:[%s2054_s15 + $0x100] sm:$0xff]  ;;  %1088 = vst [vmem:[%s2050_s8 + $0x188] sm:$0xff] %v1087_v5 }
 0x1f0   : >> { %v1091_v7 = vld [vmem:[%s2054_s15 + $0x120] sm:$0xff]  ;;  %1090 = vst [vmem:[%s2050_s8 + $0x1c0] sm:$0xff] %v1089_v6 }
 0x1f1   : >> { %v1093_v8 = vld [vmem:[%s2054_s15 + $0x140] sm:$0xff]  ;;  %1092 = vst [vmem:[%s2050_s8 + $0x1f8] sm:$0xff] %v1091_v7 }
 0x1f2   : >> { %v1095_v9 = vld [vmem:[%s2054_s15 + $0x160] sm:$0xff]  ;;  %1094 = vst [vmem:[%s2050_s8 + $0x230] sm:$0xff] %v1093_v8 }
 0x1f3   : >> { %v1097_v10 = vld [vmem:[%s2054_s15 + $0x180] sm:$0xff]  ;;  %1096 = vst [vmem:[%s2050_s8 + $0x268] sm:$0xff] %v1095_v9  ;;  %1069 = sbr.rel (!%p1066_p12) target bundleno = 487 (0x1e7), region = 190 }
 0x1f4   : >> { %v1099_v11 = vld [vmem:[%s2054_s15 + $0x1a0] sm:$0xff]  ;;  %1098 = vst [vmem:[%s2050_s8 + $0x2a0] sm:$0xff] %v1097_v10 }
 0x1f5   : >> { %v1101_v12 = vld [vmem:[%s2054_s15 + $0x1c0] sm:$0xff]  ;;  %1100 = vst [vmem:[%s2050_s8 + $0x2d8] sm:$0xff] %v1099_v11 }
 0x1f6   : >> { %v1103_v13 = vld [vmem:[%s2054_s15 + $0x1e0] sm:$0xff]  ;;  %1102 = vst [vmem:[%s2050_s8 + $0x310] sm:$0xff] %v1101_v12  ;;  %s2965_s15 = smov %s1110_s20 }
 0x1f7   : >> { %1104 = vst [vmem:[%s2050_s8 + $0x348] sm:$0xff] %v1103_v13  ;;  %s2964_s8 = smov %s1111_s27 }
 0x1f8 PF: > { %s2070_s26 = smov 1  }
 0x1f9   : > { %s1112_s28 = sshll.u32 %s2070_s26, %s2383_s23 }
 0x1fa   : > { %s2786_s29 = sadd.s32 4294967295, %s1112_s28 }
 0x1fb   : > { %v1122_v14 = vld [vmem:[%s2587_s19] sm:%s2786_s29] }
 0x1fc   : > { %v1124_v15 = vld [vmem:[%s2587_s19 + $0x20] sm:%s2786_s29]  ;;  %1123 = vst [vmem:[%s2590_s7] sm:%s2786_s29] %v1122_v14 }
 0x1fd   : > { %v1126_v16 = vld [vmem:[%s2587_s19 + $0x40] sm:%s2786_s29]  ;;  %1125 = vst [vmem:[%s2590_s7 + $0x38] sm:%s2786_s29] %v1124_v15 }
 0x1fe   : > { %v1128_v17 = vld [vmem:[%s2587_s19 + $0x60] sm:%s2786_s29]  ;;  %1127 = vst [vmem:[%s2590_s7 + $0x70] sm:%s2786_s29] %v1126_v16 }
 0x1ff   : > { %v1130_v18 = vld [vmem:[%s2587_s19 + $0x80] sm:%s2786_s29]  ;;  %1129 = vst [vmem:[%s2590_s7 + $0xa8] sm:%s2786_s29] %v1128_v17 }
 0x200   : > { %v1132_v19 = vld [vmem:[%s2587_s19 + $0xa0] sm:%s2786_s29]  ;;  %1131 = vst [vmem:[%s2590_s7 + $0xe0] sm:%s2786_s29] %v1130_v18 }
 0x201   : > { %v1134_v20 = vld [vmem:[%s2587_s19 + $0xc0] sm:%s2786_s29]  ;;  %1133 = vst [vmem:[%s2590_s7 + $0x118] sm:%s2786_s29] %v1132_v19 }
 0x202   : > { %v1136_v21 = vld [vmem:[%s2587_s19 + $0xe0] sm:%s2786_s29]  ;;  %1135 = vst [vmem:[%s2590_s7 + $0x150] sm:%s2786_s29] %v1134_v20 }
 0x203   : > { %v1138_v22 = vld [vmem:[%s2587_s19 + $0x100] sm:%s2786_s29]  ;;  %1137 = vst [vmem:[%s2590_s7 + $0x188] sm:%s2786_s29] %v1136_v21 }
 0x204   : > { %v1140_v23 = vld [vmem:[%s2587_s19 + $0x120] sm:%s2786_s29]  ;;  %1139 = vst [vmem:[%s2590_s7 + $0x1c0] sm:%s2786_s29] %v1138_v22 }
 0x205   : > { %v1142_v24 = vld [vmem:[%s2587_s19 + $0x140] sm:%s2786_s29]  ;;  %1141 = vst [vmem:[%s2590_s7 + $0x1f8] sm:%s2786_s29] %v1140_v23 }
 0x206   : > { %v1144_v25 = vld [vmem:[%s2587_s19 + $0x160] sm:%s2786_s29]  ;;  %1143 = vst [vmem:[%s2590_s7 + $0x230] sm:%s2786_s29] %v1142_v24 }
 0x207   : > { %v1146_v26 = vld [vmem:[%s2587_s19 + $0x180] sm:%s2786_s29]  ;;  %1145 = vst [vmem:[%s2590_s7 + $0x268] sm:%s2786_s29] %v1144_v25 }
 0x208   : > { %v1148_v27 = vld [vmem:[%s2587_s19 + $0x1a0] sm:%s2786_s29]  ;;  %1147 = vst [vmem:[%s2590_s7 + $0x2a0] sm:%s2786_s29] %v1146_v26 }
 0x209   : > { %v1150_v28 = vld [vmem:[%s2587_s19 + $0x1c0] sm:%s2786_s29]  ;;  %1149 = vst [vmem:[%s2590_s7 + $0x2d8] sm:%s2786_s29] %v1148_v27 }
 0x20a   : > { %v1152_v29 = vld [vmem:[%s2587_s19 + $0x1e0] sm:%s2786_s29]  ;;  %1151 = vst [vmem:[%s2590_s7 + $0x310] sm:%s2786_s29] %v1150_v28 }
 0x20b   : > { %1153 = vst [vmem:[%s2590_s7 + $0x348] sm:%s2786_s29] %v1152_v29 }
 0x20c PF: > { %p1565_p10 = scmp.ge.u32.totalorder %s2379_s5, 8 }
 0x20d   : > { %s2071_s23 = smov (!%p1565_p10), 1  }
 0x20e   : > { %782 = sbr.rel (%p1565_p10) target bundleno = 548 (0x224), region = 52  ;;  %s783_s19 = sshll.u32 (!%p1565_p10), %s2071_s23, %s2379_s5 }
 0x20f   : > { %s2854_s7 = sadd.s32 (!%p1565_p10), 4294967295, %s783_s19 }
 0x213   : > { %v793_v30 = vld [vmem:[%s2304_s21] sm:%s2854_s7] }
 0x214   : > { %v795_v31 = vld [vmem:[%s2304_s21 + $0x20] sm:%s2854_s7]  ;;  %794 = vst [vmem:[%s2377_s3] sm:%s2854_s7] %v793_v30 }
 0x215   : > { %v797_v32 = vld [vmem:[%s2304_s21 + $0x40] sm:%s2854_s7]  ;;  %796 = vst [vmem:[%s2377_s3 + $0x38] sm:%s2854_s7] %v795_v31 }
 0x216   : > { %v799_v33 = vld [vmem:[%s2304_s21 + $0x60] sm:%s2854_s7]  ;;  %798 = vst [vmem:[%s2377_s3 + $0x70] sm:%s2854_s7] %v797_v32 }
 0x217   : > { %v801_v34 = vld [vmem:[%s2304_s21 + $0x80] sm:%s2854_s7]  ;;  %800 = vst [vmem:[%s2377_s3 + $0xa8] sm:%s2854_s7] %v799_v33 }
 0x218   : > { %v803_v35 = vld [vmem:[%s2304_s21 + $0xa0] sm:%s2854_s7]  ;;  %802 = vst [vmem:[%s2377_s3 + $0xe0] sm:%s2854_s7] %v801_v34 }
 0x219   : > { %v805_v36 = vld [vmem:[%s2304_s21 + $0xc0] sm:%s2854_s7]  ;;  %804 = vst [vmem:[%s2377_s3 + $0x118] sm:%s2854_s7] %v803_v35 }
 0x21a   : > { %v807_v37 = vld [vmem:[%s2304_s21 + $0xe0] sm:%s2854_s7]  ;;  %806 = vst [vmem:[%s2377_s3 + $0x150] sm:%s2854_s7] %v805_v36 }
 0x21b   : > { %v809_v38 = vld [vmem:[%s2304_s21 + $0x100] sm:%s2854_s7]  ;;  %808 = vst [vmem:[%s2377_s3 + $0x188] sm:%s2854_s7] %v807_v37 }
 0x21c   : > { %v811_v39 = vld [vmem:[%s2304_s21 + $0x120] sm:%s2854_s7]  ;;  %810 = vst [vmem:[%s2377_s3 + $0x1c0] sm:%s2854_s7] %v809_v38 }
 0x21d   : > { %v813_v40 = vld [vmem:[%s2304_s21 + $0x140] sm:%s2854_s7]  ;;  %812 = vst [vmem:[%s2377_s3 + $0x1f8] sm:%s2854_s7] %v811_v39 }
 0x21e   : > { %v815_v41 = vld [vmem:[%s2304_s21 + $0x160] sm:%s2854_s7]  ;;  %814 = vst [vmem:[%s2377_s3 + $0x230] sm:%s2854_s7] %v813_v40 }
 0x21f   : > { %v817_v42 = vld [vmem:[%s2304_s21 + $0x180] sm:%s2854_s7]  ;;  %816 = vst [vmem:[%s2377_s3 + $0x268] sm:%s2854_s7] %v815_v41 }
 0x220   : > { %v819_v43 = vld [vmem:[%s2304_s21 + $0x1a0] sm:%s2854_s7]  ;;  %818 = vst [vmem:[%s2377_s3 + $0x2a0] sm:%s2854_s7] %v817_v42 }
 0x221   : > { %v821_v44 = vld [vmem:[%s2304_s21 + $0x1c0] sm:%s2854_s7]  ;;  %820 = vst [vmem:[%s2377_s3 + $0x2d8] sm:%s2854_s7] %v819_v43 }
 0x222   : > { %v823_v45 = vld [vmem:[%s2304_s21 + $0x1e0] sm:%s2854_s7]  ;;  %822 = vst [vmem:[%s2377_s3 + $0x310] sm:%s2854_s7] %v821_v44 }
 0x223   : > { %824 = vst [vmem:[%s2377_s3 + $0x348] sm:%s2854_s7] %v823_v45 }
 0x224 PF: > { %s16_s14 = sadd.s32 1, %s1998_s14   ;;  %s2967_s9 = smov %s1982_s10 }
 0x225   : > { %p13_p13 = scmp.ge.s32.totalorder %s16_s14, 4   ;;  %s2968_s10 = smov %s1986_s11 }
 0x226   : > { %s2969_s11 = smov %s2142_s22  ;;  %s2970_s12 = smov %s1994_s13 }
 0x227   : > { %s2971_s13 = smov %s2973_s16  ;;  %15 = sbr.rel (!%p13_p13) target bundleno = 5 (0x5), region = 201 }
 0x22c   :  { %1167 = vsyncpa [#allocation3], 1 }
 0x22d   :  { %1169 = vsyncpa [#allocation3 + $0x1], 1 }
 0x22e   :  { %1170 = vsyncpa [#allocation5], 1 }
 0x22f   :  { %1172 = vsyncpa [#allocation5 + $0x1], 1 }

</bundles_post_ra>
